<compile_context>
chip_gen: v6e
topology: v6e:2x2x1
jax: 0.10.0
libtpu: 0.0.40
codegen_flags: <defaults>
</compile_context>

<pallas_src>
import functools

import jax
import jax.numpy as jnp
from jax.experimental import pallas as pl
from jax.experimental.pallas import tpu as pltpu


def _round_up(n, m):
    return ((n + m - 1) // m) * m


def mdn_kernel(x_ref, w1t_ref, b1t_ref, wall_ref, ball_ref, out_ref, *, n_comp):
    # x: (1, TB)  -- batch on the lane axis.
    x = x_ref[...]

    # First layer (in_dim == 1): broadcasted outer product on the VPU, no MXU needed.
    #   (H, 1) * (1, TB) + (H, 1)  ->  (H, TB)
    h = jnp.tanh(w1t_ref[...] * x + b1t_ref[...])

    # Fused heads: one MXU matmul (3C, H) @ (H, TB) -> (3C, TB), one bias add.
    # (K=32 / M=24 under-fills the MXU, but the MXU has total slack here.)
    heads = jnp.dot(wall_ref[...], h,
                    preferred_element_type=jnp.float32) + ball_ref[...]

    # Sublane-aligned slices (n_comp is a multiple of 8 by construction).
    pi_logits = heads[0 * n_comp:1 * n_comp, :]   # (C, TB)
    mu        = heads[1 * n_comp:2 * n_comp, :]   # (C, TB)
    log_sigma = heads[2 * n_comp:3 * n_comp, :]   # (C, TB)

    # Numerically stable softmax over components (sublane reduction -> XLU).
    m = jnp.max(pi_logits, axis=0, keepdims=True)         # (1, TB)
    e = jnp.exp(pi_logits - m)                             # (C, TB) EUP
    s = jnp.sum(e, axis=0, keepdims=True)                  # (1, TB)
    inv = pl.reciprocal(s, approx=True)                    # EUP rcp slot
    inv = inv * (2.0 - s * inv)                            # 1 Newton step on (1, TB)

    # Single fused output slab -> one contiguous (3C, TB) writeback DMA per step.
    out_ref[0 * n_comp:1 * n_comp, :] = e * inv
    out_ref[1 * n_comp:2 * n_comp, :] = mu
    out_ref[2 * n_comp:3 * n_comp, :] = jnp.exp(log_sigma)


@functools.partial(jax.jit, static_argnames=("tile_b",))
def classical_mdn_forward(x, params, *, tile_b=1024):
    """x: (B,) float32. Returns (pi, mu, sigma), each (B, n_comp) float32."""
    (w1, b1, wpi, bpi, wmu, bmu, wsig, bsig, off) = params
    B = x.shape[0]
    H = w1.shape[1]
    C = wpi.shape[1]

    # --- pad n_comp to a sublane multiple (8); padded pi components get -inf-ish
    #     bias so they contribute exactly 0 to the softmax normalization. ---------
    C_pad = _round_up(C, 8)
    if C_pad != C:
        p = C_pad - C
        wpi = jnp.pad(wpi, ((0, 0), (0, p)))
        bpi = jnp.pad(bpi, ((0, 0), (0, p)), constant_values=-1e30)
        wmu = jnp.pad(wmu, ((0, 0), (0, p)))
        bmu = jnp.pad(bmu, ((0, 0), (0, p)))
        wsig = jnp.pad(wsig, ((0, 0), (0, p)))
        bsig = jnp.pad(bsig, ((0, 0), (0, p)))
        off = jnp.pad(off, ((0, 0), (0, p)))

    # --- host-side parameter fusion / re-layout (tiny, done once under jit) ------
    w1t = jnp.transpose(w1).astype(jnp.float32)                                   # (H, 1)
    b1t = jnp.transpose(b1).astype(jnp.float32)                                   # (H, 1)
    wall = jnp.concatenate([wpi.T, wmu.T, wsig.T], axis=0).astype(jnp.float32)    # (3C, H)
    ball = jnp.concatenate([bpi, bmu, bsig + off], axis=1).T.astype(jnp.float32)  # (3C, 1)

    # --- pad batch to a lane-friendly multiple and put it on the lane axis -------
    B_pad = _round_up(max(B, 128), 128)
    tb = _round_up(min(tile_b, B_pad), 128)
    # Keep >= 2 grid steps whenever the padded batch allows, so both v7x
    # TensorCores get work under dimension_semantics=("parallel",).
    if B_pad // tb < 2 and B_pad >= 256:
        tb = _round_up(pl.cdiv(B_pad, 2), 128)
    B_pad = _round_up(B_pad, tb)
    x2 = jnp.zeros((1, B_pad), jnp.float32).at[0, :B].set(x.astype(jnp.float32))

    grid = (B_pad // tb,)
    const = lambda i: (0, 0)

    cost = pl.CostEstimate(
        flops=2 * B_pad * H * (3 * C_pad) + 2 * B_pad * H,
        transcendentals=B_pad * (H + 2 * C_pad),      # tanh + softmax-exp + sigma-exp
        bytes_accessed=4 * (B_pad + 3 * C_pad * B_pad + 2 * H + 3 * C_pad * H + 3 * C_pad),
    )

    out_t = pl.pallas_call(
        functools.partial(mdn_kernel, n_comp=C_pad),
        out_shape=jax.ShapeDtypeStruct((3 * C_pad, B_pad), jnp.float32),
        grid=grid,
        in_specs=[
            pl.BlockSpec((1, tb), lambda i: (0, i)),       # x tile (batch on lanes)
            pl.BlockSpec((H, 1), const),                   # w1^T      (resident)
            pl.BlockSpec((H, 1), const),                   # b1^T      (resident)
            pl.BlockSpec((3 * C_pad, H), const),           # fused W^T (resident)
            pl.BlockSpec((3 * C_pad, 1), const),           # fused b   (resident)
        ],
        out_specs=pl.BlockSpec((3 * C_pad, tb), lambda i: (0, i)),
        compiler_params=pltpu.CompilerParams(dimension_semantics=("parallel",)),
        cost_estimate=cost,
    )(x2, w1t, b1t, wall, ball)

    # Single relayout pass back to the module's (B, n_comp) convention, then split.
    out_bt = out_t[:, :B].T                                # (B, 3*C_pad), one transpose
    pi = out_bt[:, 0 * C_pad:0 * C_pad + C]
    mu = out_bt[:, 1 * C_pad:1 * C_pad + C]
    sigma = out_bt[:, 2 * C_pad:2 * C_pad + C]
    return pi, mu, sigma


def init_params(key, in_dim=1, n_comp=8, n_neuron=32):
    """Deterministic synthetic parameters, stored as (in, out) + (1, out) rows."""
    ks = jax.random.split(key, 8)
    scale1 = 1.0 / jnp.sqrt(in_dim)
    scaleh = 1.0 / jnp.sqrt(n_neuron)
    w1 = jax.random.uniform(ks[0], (in_dim, n_neuron), jnp.float32, -scale1, scale1)
    b1 = jax.random.uniform(ks[1], (1, n_neuron), jnp.float32, -scale1, scale1)
    wpi = jax.random.uniform(ks[2], (n_neuron, n_comp), jnp.float32, -scaleh, scaleh)
    bpi = jax.random.uniform(ks[3], (1, n_comp), jnp.float32, -scaleh, scaleh)
    wmu = jax.random.uniform(ks[4], (n_neuron, n_comp), jnp.float32, -scaleh, scaleh)
    bmu = jax.random.uniform(ks[5], (1, n_comp), jnp.float32, -scaleh, scaleh)
    wsig = jax.random.uniform(ks[6], (n_neuron, n_comp), jnp.float32, -scaleh, scaleh)
    bsig = jax.random.uniform(ks[7], (1, n_comp), jnp.float32, -scaleh, scaleh)
    off = jnp.zeros((1, n_comp), jnp.float32)  # log_sigma_offset (zeros like nn.Parameter)
    return (w1, b1, wpi, bpi, wmu, bmu, wsig, bsig, off)


def reference_forward(x, params):
    (w1, b1, wpi, bpi, wmu, bmu, wsig, bsig, off) = params
    x2 = x.reshape(-1, 1).astype(jnp.float32)
    h = jnp.tanh(x2 @ w1 + b1)
    pi = jax.nn.softmax(h @ wpi + bpi, axis=-1)
    mu = h @ wmu + bmu
    sigma = jnp.exp(h @ wsig + bsig + off)
    return pi, mu, sigma


if __name__ == "__main__":
    key = jax.random.PRNGKey(0)
    kx, kp = jax.random.split(key)

    # Small shapes; non-multiple-of-128 batch exercises the padding + 2-step grid path.
    B, n_comp, n_neuron = 200, 8, 32
    x = jax.random.uniform(kx, (B,), jnp.float32)   # logistic-map-style values in [0, 1)
    params = init_params(kp, in_dim=1, n_comp=n_comp, n_neuron=n_neuron)

    pi, mu, sigma = classical_mdn_forward(x, params)   # grid = (2,)
    jax.block_until_ready((pi, mu, sigma))

    # sanity check against a plain-JAX reference
    pi_r, mu_r, sig_r = reference_forward(x, params)
    assert pi.shape == (B, n_comp) and mu.shape == (B, n_comp) and sigma.shape == (B, n_comp)
    assert jnp.allclose(pi, pi_r, atol=1e-4), "pi mismatch"
    assert jnp.allclose(mu, mu_r, atol=1e-5), "mu mismatch"
    assert jnp.allclose(sigma, sig_r, atol=1e-4), "sigma mismatch"

    print("KERNEL_OK")
</pallas_src>

<mosaic_0001>
module attributes {stable_mosaic.version = 11 : i64} {
  func.func @mdn_kernel(%arg0: i32, %arg1: memref<1x128xf32, #tpu.memory_space<vmem>>, %arg2: memref<32x1xf32, #tpu.memory_space<vmem>>, %arg3: memref<32x1xf32, #tpu.memory_space<vmem>>, %arg4: memref<24x32xf32, #tpu.memory_space<vmem>>, %arg5: memref<24x1xf32, #tpu.memory_space<vmem>>, %arg6: memref<24x128xf32, #tpu.memory_space<vmem>>) attributes {dimension_semantics = [#tpu.dimension_semantics<parallel>], iteration_bounds = array<i64: 2>, scalar_prefetch = 0 : i64, scratch_operands = 0 : i64, tpu.core_type = #tpu.core_type<tc>, window_params = [{transform_indices = @transform_0, window_bounds = array<i64: 1, 128>}, {pipeline_mode = #tpu.pipeline_mode<synchronous>, transform_indices = @transform_1, window_bounds = array<i64: 32, 1>}, {pipeline_mode = #tpu.pipeline_mode<synchronous>, transform_indices = @transform_2, window_bounds = array<i64: 32, 1>}, {pipeline_mode = #tpu.pipeline_mode<synchronous>, transform_indices = @transform_3, window_bounds = array<i64: 24, 32>}, {pipeline_mode = #tpu.pipeline_mode<synchronous>, transform_indices = @transform_4, window_bounds = array<i64: 24, 1>}, {transform_indices = @transform_5, window_bounds = array<i64: 24, 128>}]} {
    %c0 = arith.constant 0 : index
    %c0_0 = arith.constant 0 : index
    %0 = vector.load %arg1[%c0, %c0_0] : memref<1x128xf32, #tpu.memory_space<vmem>>, vector<1x128xf32>
    %c0_1 = arith.constant 0 : index
    %c0_2 = arith.constant 0 : index
    %1 = vector.load %arg2[%c0_1, %c0_2] : memref<32x1xf32, #tpu.memory_space<vmem>>, vector<32x1xf32>
    %2 = vector.broadcast %1 : vector<32x1xf32> to vector<32x128xf32>
    %3 = vector.broadcast %0 : vector<1x128xf32> to vector<32x128xf32>
    %4 = arith.mulf %2, %3 : vector<32x128xf32>
    %c0_3 = arith.constant 0 : index
    %c0_4 = arith.constant 0 : index
    %5 = vector.load %arg3[%c0_3, %c0_4] : memref<32x1xf32, #tpu.memory_space<vmem>>, vector<32x1xf32>
    %6 = vector.broadcast %5 : vector<32x1xf32> to vector<32x128xf32>
    %7 = arith.addf %4, %6 : vector<32x128xf32>
    %8 = math.tanh %7 : vector<32x128xf32>
    %c0_5 = arith.constant 0 : index
    %c0_6 = arith.constant 0 : index
    %9 = vector.load %arg4[%c0_5, %c0_6] : memref<24x32xf32, #tpu.memory_space<vmem>>, vector<24x32xf32>
    %cst = arith.constant dense<0.000000e+00> : vector<24x128xf32>
    %10 = tpu.matmul %9, %8, %cst {dimension_numbers = #tpu.dot_dimension_numbers<[1], [0], [0], [1], [0, 0, 1, 1], [], []>} : vector<24x32xf32>, vector<32x128xf32>, vector<24x128xf32> -> vector<24x128xf32>
    %c0_7 = arith.constant 0 : index
    %c0_8 = arith.constant 0 : index
    %11 = vector.load %arg5[%c0_7, %c0_8] : memref<24x1xf32, #tpu.memory_space<vmem>>, vector<24x1xf32>
    %12 = vector.broadcast %11 : vector<24x1xf32> to vector<24x128xf32>
    %13 = arith.addf %10, %12 : vector<24x128xf32>
    %14 = vector.extract_strided_slice %13 {offsets = [0, 0], sizes = [8, 128], strides = [1, 1]} : vector<24x128xf32> to vector<8x128xf32>
    %15 = vector.extract_strided_slice %13 {offsets = [8, 0], sizes = [8, 128], strides = [1, 1]} : vector<24x128xf32> to vector<8x128xf32>
    %16 = vector.extract_strided_slice %13 {offsets = [16, 0], sizes = [8, 128], strides = [1, 1]} : vector<24x128xf32> to vector<8x128xf32>
    %cst_9 = arith.constant dense<0xFF800000> : vector<128xf32>
    %17 = vector.multi_reduction <maximumf>, %14, %cst_9 [0] : vector<8x128xf32> to vector<128xf32>
    %18 = vector.shape_cast %17 : vector<128xf32> to vector<1x128xf32>
    %19 = vector.broadcast %18 : vector<1x128xf32> to vector<8x128xf32>
    %20 = arith.subf %14, %19 : vector<8x128xf32>
    %21 = math.exp %20 : vector<8x128xf32>
    %cst_10 = arith.constant dense<0.000000e+00> : vector<128xf32>
    %22 = vector.multi_reduction <add>, %21, %cst_10 [0] : vector<8x128xf32> to vector<128xf32>
    %23 = vector.shape_cast %22 : vector<128xf32> to vector<1x128xf32>
    %24 = tpu.reciprocal %23 {approx = true} : vector<1x128xf32> -> vector<1x128xf32>
    %25 = arith.mulf %23, %24 : vector<1x128xf32>
    %cst_11 = arith.constant 2.000000e+00 : f32
    %26 = vector.broadcast %cst_11 : f32 to vector<1x128xf32>
    %27 = arith.subf %26, %25 : vector<1x128xf32>
    %28 = arith.mulf %24, %27 : vector<1x128xf32>
    %29 = vector.broadcast %28 : vector<1x128xf32> to vector<8x128xf32>
    %30 = arith.mulf %21, %29 : vector<8x128xf32>
    %c0_12 = arith.constant 0 : index
    %c0_13 = arith.constant 0 : index
    %31 = vector.load %arg6[%c0_12, %c0_13] : memref<24x128xf32, #tpu.memory_space<vmem>>, vector<8x128xf32>
    tpu.vector_store %arg6[%c0_12, %c0_13], %30 {strides = array<i32>} : memref<24x128xf32, #tpu.memory_space<vmem>>, vector<8x128xf32>,
    %c8 = arith.constant 8 : index
    %c0_14 = arith.constant 0 : index
    %32 = vector.load %arg6[%c8, %c0_14] : memref<24x128xf32, #tpu.memory_space<vmem>>, vector<8x128xf32>
    tpu.vector_store %arg6[%c8, %c0_14], %15 {strides = array<i32>} : memref<24x128xf32, #tpu.memory_space<vmem>>, vector<8x128xf32>,
    %33 = math.exp %16 : vector<8x128xf32>
    %c16 = arith.constant 16 : index
    %c0_15 = arith.constant 0 : index
    %34 = vector.load %arg6[%c16, %c0_15] : memref<24x128xf32, #tpu.memory_space<vmem>>, vector<8x128xf32>
    tpu.vector_store %arg6[%c16, %c0_15], %33 {strides = array<i32>} : memref<24x128xf32, #tpu.memory_space<vmem>>, vector<8x128xf32>,
    return
  }
  func.func @transform_0(%arg0: i32) -> (i32, i32) {
    %c0_i32 = arith.constant 0 : i32
    %c0_i32_0 = arith.constant 0 : i32
    return %c0_i32, %arg0 : i32, i32
  }
  func.func @transform_1(%arg0: i32) -> (i32, i32) {
    %c0_i32 = arith.constant 0 : i32
    %c0_i32_0 = arith.constant 0 : i32
    %c0_i32_1 = arith.constant 0 : i32
    return %c0_i32, %c0_i32_0 : i32, i32
  }
  func.func @transform_2(%arg0: i32) -> (i32, i32) {
    %c0_i32 = arith.constant 0 : i32
    %c0_i32_0 = arith.constant 0 : i32
    %c0_i32_1 = arith.constant 0 : i32
    return %c0_i32, %c0_i32_0 : i32, i32
  }
  func.func @transform_3(%arg0: i32) -> (i32, i32) {
    %c0_i32 = arith.constant 0 : i32
    %c0_i32_0 = arith.constant 0 : i32
    %c0_i32_1 = arith.constant 0 : i32
    return %c0_i32, %c0_i32_0 : i32, i32
  }
  func.func @transform_4(%arg0: i32) -> (i32, i32) {
    %c0_i32 = arith.constant 0 : i32
    %c0_i32_0 = arith.constant 0 : i32
    %c0_i32_1 = arith.constant 0 : i32
    return %c0_i32, %c0_i32_0 : i32, i32
  }
  func.func @transform_5(%arg0: i32) -> (i32, i32) {
    %c0_i32 = arith.constant 0 : i32
    %c0_i32_0 = arith.constant 0 : i32
    return %c0_i32, %arg0 : i32, i32
  }
}

</mosaic_0001>

<bundles_post_ra>
// kernel: classical_mdn_forward.1
= control target key start
LH: loop header
LB: loop body
LE: loop exit
PB: predicated region body
PF: predicated region fallthrough
CT: control target
= control target key end

     0   :  { %s658_s18 = smov 0   ;;  %s660_s19 = smov 0   ;;  %s762_s0 = inlined_call_operand.vmem [shape: f32[1,256], index: 0, kind: input, shape index: {}]   ;;  %s763_s1 = inlined_call_operand.vmem [shape: f32[32,1], index: 1, kind: input, shape index: {}]   ;;  %s764_s2 = inlined_call_operand.vmem [shape: f32[32,1], index: 2, kind: input, shape index: {}]   ;;  %s765_s3 = inlined_call_operand.vmem [shape: f32[24,32], index: 3, kind: input, shape index: {}]   ;;  %s766_s4 = inlined_call_operand.vmem [shape: f32[24,1], index: 4, kind: input, shape index: {}]   ;;  %s767_s5 = inlined_call_operand.vmem [shape: f32[24,256], index: 5, kind: output, shape index: {}]  }
   0x1   :  { %s662_s20 = smov 0  }
   0x2 LB: > { %s671_s21 = sadd.s32 4294967295, %s623_s20   ;;  %s673_s22 = sadd.s32 1, %s623_s20   ;;  %s623_s20 = sphi %s662_s20, %s771_s20   ;;  %s619_s19 = sphi %s660_s19, %s770_s19   ;;  %s615_s18 = sphi %s658_s18, %s769_s18  }
   0x3   : > { %s129_s23 = ssub.s32 %s623_s20, %s673_s22  ;;  %s132_s24 = sadd.s32 1, %s619_s19 }
   0x4   : > { %p130_p0 = scmp.eq.s32.totalorder %s129_s23, 0  ;;  %p142_p1 = scmp.ne.s32.totalorder %s619_s19, %s615_s18 }
   0x5   : > { %p143_p2 = scmp.eq.s32.totalorder %s671_s21, 1  ;;  %p517_p3 = scmp.ge.s32.totalorder %s623_s20, 1 }
   0x6   : > { %s681_s25 = scalar_select %p130_p0, %s619_s19, %s132_s24  }
   0x7   : > { %p683_p4 = por %p143_p2, %p142_p1  ;;  %p185_p5 = scmp.lt.s32.totalorder %s623_s20, 3 }
   0x9   : > { %p186_p6 = pnand %p517_p3, %p185_p5 }
   0xa   : > { %p210_p7 = scmp.lt.s32.totalorder (!%p186_p6), %s671_s21, 1  ;;  %s207_s15 = sand.u32 (!%p186_p6), 1, %s615_s18  }
   0xb   : > { %189 = sbr.rel (%p186_p6) target bundleno = 441 (0x1b9), region = 40 }
   0xc   : > { %s557_s16 = smul.u32 (!%p186_p6), 24, %s207_s15 }
   0xe   : > { %s738_s17 = scalar_lea.vmem (!%p186_p6), [#allocation2], %s557_s16 }
  0x10   : > { %v251_v0 = vld [vmem:[%s764_s2 + $0x18] sm:$0xff]  ;;  %v625_v2 = vmov 0   ;;  %v216_v3 = vld [vmem:[%s763_s1 + $0x10] sm:$0xff]  ;;  %v215_v4 = vld [vmem:[%s763_s1 + $0x8] sm:$0xff]  ;;  %v626_v11 = vmov 0.0   ;;  %vm627_vm0 = vmmov 0  }
  0x11   : > { %v217_v1 = vld [vmem:[%s763_s1 + $0x18] sm:$0xff]  ;;  %586 = vset.pattern.permute.xlu1 %v625_v2  ;;  %585 = vset.pattern.permute.xlu0 %v625_v2  ;;  %v250_v5 = vld [vmem:[%s764_s2 + $0x10] sm:$0xff]  ;;  %v214_v6 = vld [vmem:[%s763_s1] sm:$0xff]  ;;  %s211_s30 = scalar_select %p210_p7, %s671_s21, 1  ;;  %vm301_vm1 = vcmask 261120  }
  0x12   : > { %269 = vperm.xlu1 %586, %v251_v0   ;;  %235 = vperm.xlu0 %585, %v217_v1   ;;  %v249_v7 = vld [vmem:[%s764_s2 + $0x8] sm:$0xff]  ;;  %v248_v8 = vld [vmem:[%s764_s2] sm:$0xff]  ;;  %v285_v10 = vld [vmem:[%s766_s4 + $0x10] sm:$0xff]  ;;  %s522_s18 = sshll.u32 (%p683_p4), %s671_s21, 3 }
  0x13   : > { %v283_v9 = vld [vmem:[%s766_s4] sm:$0xff]  ;;  %532 = vmatprep.subr.mxu0 %v626_v11  ;;  %549 = vmatprep.subr.mxu1 %v626_v11  ;;  %v284_v12 = vld [vmem:[%s766_s4 + $0x8] sm:$0xff]  ;;  %s212_s8 = scalar_lea.vmem %s762_s0, %s211_s30  ;;  %v282_v36 = vld [vmem:[%s765_s3 + $0x10] sm:$0xff]  ;;  %s424_s24 = scalar_lea.vmem (%p683_p4), %s767_s5, %s522_s18 }
  0x14   : > { %540 = vmatprep.mubr.msk.f32.mxu0 %vm627_vm0, %v626_v11  ;;  %543 = vmatprep.mubr.msk.f32.mxu1 %vm627_vm0, %v626_v11  ;;  %v518_v13 = vld [vmem:[%s212_s8] ss:$0 sm:$0xff]  ;;  %v281_v34 = vld [vmem:[%s765_s3 + $0x8] sm:$0xff] }
  0x15   : > { %v280_v33 = vld [vmem:[%s765_s3] sm:$0xff] }
  0x16   : > { %230 = vperm.xlu0 %585, %v216_v3   ;;  %225 = vperm.xlu1 %586, %v215_v4  }
  0x1a   : > { %264 = vperm.xlu0 %585, %v250_v5   ;;  %220 = vperm.xlu1 %586, %v214_v6  }
  0x1e   : > { %259 = vperm.xlu0 %585, %v249_v7   ;;  %254 = vperm.xlu1 %586, %v248_v8  }
  0x22   : > { %288 = vperm.xlu0 %585, %v283_v9   ;;  %298 = vperm.xlu1 %586, %v285_v10  }
  0x26   : > { %293 = vperm.xlu0 %585, %v284_v12  }
  0x8d   : > { %v270_v14 = vpop.permute.xlu1 %269  ;;  %v236_v15 = vpop.permute.xlu0 %235 }
  0x8e   : > { %v247_v16 = vmul.f32 %v518_v13, %v236_v15 }
  0x90   : > { %v275_v17 = vadd.f32 %v270_v14, %v247_v16 }
  0x91   : > { %v231_v18 = vpop.permute.xlu0 %230  ;;  %v226_v19 = vpop.permute.xlu1 %225 }
  0x92   : > { %587 = vtanh.f32 %v275_v17  ;;  %v246_v20 = vmul.f32 %v518_v13, %v231_v18  ;;  %v245_v24 = vmul.f32 %v518_v13, %v226_v19 }
  0x95   : > { %v265_v21 = vpop.permute.xlu0 %264  ;;  %v221_v22 = vpop.permute.xlu1 %220 }
  0x96   : > { %v274_v23 = vadd.f32 %v265_v21, %v246_v20  ;;  %v244_v25 = vmul.f32 %v518_v13, %v221_v22 }
  0x98   : > { %589 = vtanh.f32 %v274_v23 }
  0x99   : > { %v260_v26 = vpop.permute.xlu0 %259  ;;  %v255_v27 = vpop.permute.xlu1 %254 }
  0x9a   : > { %v273_v28 = vadd.f32 %v260_v26, %v245_v24  ;;  %v272_v29 = vadd.f32 %v255_v27, %v244_v25 }
  0x9c   : > { %591 = vtanh.f32 %v273_v28 }
  0x9d   : > { %593 = vtanh.f32 %v272_v29  ;;  %v289_v37 = vpop.permute.xlu0 %288  ;;  %v299_v46 = vpop.permute.xlu1 %298 }
  0x9f   : > { %v588_v30 = vpop.eup %587 }
  0xa0   : > { %533 = vmatpush3.msra.mxu0 %v588_v30  ;;  %553 = vmatpush3.msra.mxu1 %v588_v30 }
  0xa1   : > { %534 = vmatprep.subr.mxu0 %v626_v11  ;;  %550 = vmatprep.subr.mxu1 %v626_v11  ;;  %v294_v38 = vpop.permute.xlu0 %293 }
  0xa5   : > { %v590_v31 = vpop.eup %589 }
  0xa6   : > { %535 = vmatpush3.msra.mxu0 %v590_v31  ;;  %554 = vmatpush3.msra.mxu1 %v590_v31 }
  0xa7   : > { %536 = vmatprep.subr.mxu0 %v626_v11  ;;  %551 = vmatprep.subr.mxu1 %v626_v11 }
  0xa9   : > { %v592_v32 = vpop.eup %591 }
  0xaa   : > { %537 = vmatpush3.msra.mxu0 %v592_v32  ;;  %555 = vmatpush3.msra.mxu1 %v592_v32  ;;  %v594_v35 = vpop.eup %593 }
  0xab   : > { %538 = vmatprep.subr.mxu0 %v626_v11  ;;  %552 = vmatprep.subr.mxu1 %v626_v11 }
  0xac   : > { %539 = vmatpush3.msra.mxu0 %v594_v35  ;;  %556 = vmatpush3.msra.mxu1 %v594_v35 }
  0xad   : > { %541 = vmatmul.mubr.msk.f32.vlgmr.msra.gmra.mxu0 %vm301_vm1, %v280_v33  ;;  %544 = vmatmul.mubr.msk.f32.vlgmr.msra.gmra.mxu1 %vm301_vm1, %v281_v34 }
  0xae   : > { %546 = vmatprep.mubr.msk.f32.mxu1 %vm627_vm0, %v626_v11 }
  0xb1   : > { %547 = vmatmul.mubr.msk.f32.gmra.mxu1 %vm301_vm1, %v282_v36 }
 0x16d   : > { %v377_v39 = vpop.f32.mrf.mxu0  ;;  %v382_v40 = vpop.f32.mrf.mxu1 }
 0x16e   : > { %v378_v41 = vadd.f32 %v377_v39, %v289_v37  ;;  %v383_v42 = vadd.f32 %v382_v40, %v294_v38 }
 0x16f   : > { %v542_v43 = vpop.f32.mrf.mxu0  ;;  %v545_v44 = vpop.f32.mrf.mxu1 }
 0x170   : > { %v391_v45 = vrot.slane %v378_v41, 4  ;;  %412 = vst [vmem:[%s738_s17 + $0x8] sm:$0xff] %v383_v42 }
 0x171   : > { %v387_v47 = vpop.f32.mrf.mxu1 }
 0x172   : > { %v392_v48 = vmax.f32 %v378_v41, %v391_v45  ;;  %v388_v49 = vadd.f32 %v387_v47, %v299_v46 }
 0x173   : > { %v548_v50 = vpop.f32.mrf.mxu1 }
 0x174   : > { %v393_v51 = vrot.slane %v392_v48, 2  ;;  %v413_v52 = vmul.f32 1.442695, %v388_v49 }
 0x176   : > { %v394_v53 = vmax.f32 %v392_v48, %v393_v51  ;;  %595 = vpow2.f32 %v413_v52 }
 0x177   : > { %v459_v8 = vld [vmem:[%s738_s17 + $0x8] sm:$0xff] (%p683_p4) }
 0x178   : > { %v395_v54 = vrot.slane %v394_v53, 1  ;;  %460 = vst [vmem:[%s424_s24 + $0x10] sm:$0xff] (%p683_p4), %v459_v8 }
 0x17a   : > { %v396_v55 = vmax.f32 %v394_v53, %v395_v54 }
 0x17c   : > { %v397_v56 = vsub.f32 %v378_v41, %v396_v55 }
 0x17e   : > { %v398_v57 = vmul.f32 1.442695, %v397_v56 }
 0x180   : > { %597 = vpow2.f32 %v398_v57 }
 0x183   : > { %v596_v58 = vpop.eup %595 }
 0x184   : > { %415 = vst [vmem:[%s738_s17 + $0x10] sm:$0xff] %v596_v58 }
 0x18b   : > { %v461_v9 = vld [vmem:[%s738_s17 + $0x10] sm:$0xff] (%p683_p4) }
 0x18c   : > { %462 = vst [vmem:[%s424_s24 + $0x20] sm:$0xff] (%p683_p4), %v461_v9 }
 0x18d   : > { %v598_v59 = vpop.eup %597 }
 0x18e   : > { %v400_v60 = vrot.slane %v598_v59, 4 }
 0x190   : > { %v401_v61 = vadd.f32 %v598_v59, %v400_v60 }
 0x192   : > { %v402_v62 = vrot.slane %v401_v61, 2 }
 0x194   : > { %v403_v63 = vadd.f32 %v402_v62, %v401_v61 }
 0x196   : > { %v404_v0 = vrot.slane %v403_v63, 1 }
 0x198   : > { %v405_v1 = vadd.f32 %v404_v0, %v403_v63 }
 0x19a   : > { %599 = vrcp.f32 %v405_v1 }
 0x1a7   : > { %v600_v2 = vpop.eup %599 }
 0x1a8   : > { %v407_v3 = vmul.f32 %v600_v2, %v405_v1 }
 0x1aa   : > { %v408_v4 = vsub.f32 2.0, %v407_v3 }
 0x1ac   : > { %v409_v5 = vmul.f32 %v600_v2, %v408_v4  ;;  %422 = sbr.rel (!%p683_p4) target bundleno = 441 (0x1b9), region = 44 }
 0x1ae   : > { %v410_v6 = vmul.f32 %v598_v59, %v409_v5 }
 0x1b0   : > { %411 = vst [vmem:[%s738_s17] sm:$0xff] %v410_v6 }
 0x1b7   : > { %v457_v7 = vld [vmem:[%s738_s17] sm:$0xff] }
 0x1b8   : > { %458 = vst [vmem:[%s424_s24] sm:$0xff] %v457_v7 }
 0x1b9 PF: > { %p12_p8 = scmp.ge.s32.totalorder %s673_s22, 4   ;;  %s769_s18 = smov %s619_s19 }
 0x1ba   : > { %s770_s19 = smov %s681_s25  ;;  %s771_s20 = smov %s673_s22 }
 0x1bb   :  { %14 = sbr.rel (!%p12_p8) target bundleno = 2 (0x2), region = 108 }

</bundles_post_ra>
